<compile_context>
chip_gen: v7x
topology: tpu7x:2x2x1
jax: 0.10.0
libtpu: 0.0.40
codegen_flags: <defaults>
</compile_context>

<pallas_src>
import functools

import jax
import jax.numpy as jnp
from jax.experimental import pallas as pl
from jax.experimental.pallas import tpu as pltpu


def _reeig_bimap_bn_kernel(u_ref, lam_ref, w_ref, a_ref, out_ref, *, eps):
    """One batch element, all channels: fused ReEig + BiMap + BN congruence."""
    u = u_ref[0]                          # (C, n_in, n_in)   eigenvectors
    lam = jnp.maximum(lam_ref[0], eps)    # (C, n_in)         ReEig rectification (VPU)
    w = w_ref[...]                        # (C_out, C_in, n_in, n_out)
    a = a_ref[...]                        # (n_out, n_out)    A = Gw^{1/2} Gm^{-1/2}

    c, n_in, _ = u.shape
    n_out = a.shape[0]
    cc = c * c                            # flattened (co, ci) pairs

    # Fold the BN congruence into the BiMap weights: AW[co,ci] = A @ W[co,ci]^T.
    w_flat = w.reshape(cc, n_in, n_out)                                   # (cc, n_in, n_out)
    a_b = jnp.broadcast_to(a[None], (cc, n_out, n_out))
    aw = jnp.einsum('pik,pjk->pij', a_b, w_flat,
                    preferred_element_type=jnp.float32)                   # (cc, n_out, n_in)

    # T[co,ci] = AW[co,ci] @ U[ci]   (never materialize the n_in x n_in matrix)
    u_b = jnp.broadcast_to(u[None], (c, c, n_in, n_in)).reshape(cc, n_in, n_in)
    lam_b = jnp.broadcast_to(lam[None], (c, c, n_in)).reshape(cc, n_in)
    t = jnp.einsum('pij,pjk->pik', aw, u_b,
                   preferred_element_type=jnp.float32)                    # (cc, n_out, n_in)

    # Z contribution per (co, ci): T diag(lam_re) T^T, then sum over ci.
    y = jnp.einsum('pij,pkj->pik', t * lam_b[:, None, :], t,
                   preferred_element_type=jnp.float32)                    # (cc, n_out, n_out)
    out_ref[0] = y.reshape(c, c, n_out, n_out).sum(axis=1).astype(out_ref.dtype)


def _spd_power(g, p):
    """SPD matrix power via eigendecomposition (plain-JAX glue)."""
    e, q = jnp.linalg.eigh(g)
    return (q * (e ** p)[None, :]) @ q.T


def bimap_1_reduced(x, w, bn_running_mean, bn_weight, eps=1e-4):
    """Pallas implementation of BiMap_1_reduced.forward (inference-mode BN)."""
    B, C, n_in, n_in2 = x.shape
    assert n_in == n_in2, "expects square SPD matrices"
    n_out = w.shape[-1]

    xf = x.astype(jnp.float32)
    wf = w.astype(jnp.float32)

    # TODO(synk): symmetric eigendecomposition (ReEig spectrum) and the SPD
    # matrix square roots of the BatchNorm parameters have no Pallas
    # equivalent; they are computed with jnp.linalg.eigh as plain-JAX glue.
    lam, u = jnp.linalg.eigh(xf)                                  # (B,C,n_in), (B,C,n_in,n_in)
    a_mat = (_spd_power(bn_weight.astype(jnp.float32), 0.5)
             @ _spd_power(bn_running_mean.astype(jnp.float32), -0.5))   # (n_out, n_out)

    # TODO(synk): training-mode BatchNormSPD (Riemannian barycenter of the
    # batch, itself an iterative eigh loop) is not translated; the inference
    # normalization with the given (running_mean, weight) SPD params is used.

    out = pl.pallas_call(
        functools.partial(_reeig_bimap_bn_kernel, eps=float(eps)),
        out_shape=jax.ShapeDtypeStruct((B, C, n_out, n_out), jnp.float32),
        grid=(B,),
        in_specs=[
            pl.BlockSpec((1, C, n_in, n_in), lambda b: (b, 0, 0, 0)),   # U
            pl.BlockSpec((1, C, n_in), lambda b: (b, 0, 0)),            # lam (dense 2D per step)
            pl.BlockSpec((C, C, n_in, n_out), lambda b: (0, 0, 0, 0)),  # BiMap weights
            pl.BlockSpec((n_out, n_out), lambda b: (0, 0)),             # folded BN matrix A
        ],
        out_specs=pl.BlockSpec((1, C, n_out, n_out), lambda b: (b, 0, 0, 0)),
        compiler_params=pltpu.CompilerParams(dimension_semantics=("parallel",)),
    )(u, lam, wf, a_mat)

    return out


def _reference(x, w, bn_running_mean, bn_weight, eps=1e-4):
    """Plain-JAX reference mirroring ReEig -> BiMap -> BatchNormSPD (eval)."""
    lam, u = jnp.linalg.eigh(x)
    s = (u * jnp.maximum(lam, eps)[..., None, :]) @ jnp.swapaxes(u, -1, -2)
    y = jnp.einsum('ocij,bcik,ockl->bojl', w, s, w)       # sum over input channels
    a = _spd_power(bn_weight, 0.5) @ _spd_power(bn_running_mean, -0.5)
    return jnp.einsum('ij,bojk,lk->boil', a, y, a)


if __name__ == "__main__":
    key = jax.random.PRNGKey(0)
    B, C, n_in, n_out = 2, 4, 16, 8
    k1, k2, k3, k4 = jax.random.split(key, 4)

    # Deterministic SPD input batch: (A A^T)/n + 0.5 I.
    a0 = jax.random.normal(k1, (B, C, n_in, n_in), dtype=jnp.float32)
    x = a0 @ jnp.swapaxes(a0, -1, -2) / n_in + 0.5 * jnp.eye(n_in, dtype=jnp.float32)

    # BiMap weights: one semi-orthogonal (n_in, n_out) matrix per (co, ci).
    wg = jax.random.normal(k2, (C, C, n_in, n_in), dtype=jnp.float32)
    q, _ = jnp.linalg.qr(wg)
    w = q[..., :n_out]                                    # (C, C, n_in, n_out)

    # BatchNormSPD parameters (SPD running mean and SPD weight/bias).
    gm = jax.random.normal(k3, (n_out, n_out), dtype=jnp.float32)
    bn_running_mean = gm @ gm.T / n_out + 0.5 * jnp.eye(n_out, dtype=jnp.float32)
    gw = jax.random.normal(k4, (n_out, n_out), dtype=jnp.float32)
    bn_weight = gw @ gw.T / n_out + 0.5 * jnp.eye(n_out, dtype=jnp.float32)

    out = bimap_1_reduced(x, w, bn_running_mean, bn_weight)
    out = jax.block_until_ready(out)

    ref = _reference(x, w, bn_running_mean, bn_weight)
    assert out.shape == (B, C, n_out, n_out), out.shape
    rel_err = float(jnp.max(jnp.abs(out - ref)) / jnp.max(jnp.abs(ref)))
    assert rel_err < 2e-2, rel_err
    print("KERNEL_OK")
</pallas_src>

<mosaic_0001>
module attributes {stable_mosaic.version = 11 : i64} {
  func.func @_reeig_bimap_bn_kernel(%arg0: i32, %arg1: memref<1x4x16x16xf32, #tpu.memory_space<vmem>>, %arg2: memref<1x4x16xf32, #tpu.memory_space<vmem>>, %arg3: memref<4x4x16x8xf32, #tpu.memory_space<vmem>>, %arg4: memref<8x8xf32, #tpu.memory_space<vmem>>, %arg5: memref<1x4x8x8xf32, #tpu.memory_space<vmem>>) attributes {dimension_semantics = [#tpu.dimension_semantics<parallel>], iteration_bounds = array<i64: 2>, scalar_prefetch = 0 : i64, scratch_operands = 0 : i64, tpu.core_type = #tpu.core_type<tc>, window_params = [{transform_indices = @transform_0, window_bounds = array<i64: 1, 4, 16, 16>}, {transform_indices = @transform_1, window_bounds = array<i64: 1, 4, 16>}, {pipeline_mode = #tpu.pipeline_mode<synchronous>, transform_indices = @transform_2, window_bounds = array<i64: 4, 4, 16, 8>}, {pipeline_mode = #tpu.pipeline_mode<synchronous>, transform_indices = @transform_3, window_bounds = array<i64: 8, 8>}, {transform_indices = @transform_4, window_bounds = array<i64: 1, 4, 8, 8>}]} {
    %c0 = arith.constant 0 : index
    %c0_0 = arith.constant 0 : index
    %c0_1 = arith.constant 0 : index
    %c0_2 = arith.constant 0 : index
    %0 = vector.load %arg1[%c0, %c0_0, %c0_1, %c0_2] : memref<1x4x16x16xf32, #tpu.memory_space<vmem>>, vector<1x4x16x16xf32>
    %1 = vector.shape_cast %0 : vector<1x4x16x16xf32> to vector<4x16x16xf32>
    %c0_3 = arith.constant 0 : index
    %c0_4 = arith.constant 0 : index
    %c0_5 = arith.constant 0 : index
    %2 = vector.load %arg2[%c0_3, %c0_4, %c0_5] : memref<1x4x16xf32, #tpu.memory_space<vmem>>, vector<1x4x16xf32>
    %3 = vector.shape_cast %2 : vector<1x4x16xf32> to vector<4x16xf32>
    %cst = arith.constant 9.99999974E-5 : f32
    %4 = vector.broadcast %cst : f32 to vector<4x16xf32>
    %5 = arith.maximumf %3, %4 : vector<4x16xf32>
    %c0_6 = arith.constant 0 : index
    %c0_7 = arith.constant 0 : index
    %c0_8 = arith.constant 0 : index
    %c0_9 = arith.constant 0 : index
    %6 = vector.load %arg3[%c0_6, %c0_7, %c0_8, %c0_9] : memref<4x4x16x8xf32, #tpu.memory_space<vmem>>, vector<4x4x16x8xf32>
    %c0_10 = arith.constant 0 : index
    %c0_11 = arith.constant 0 : index
    %7 = vector.load %arg4[%c0_10, %c0_11] : memref<8x8xf32, #tpu.memory_space<vmem>>, vector<8x8xf32>
    %8 = vector.shape_cast %6 : vector<4x4x16x8xf32> to vector<16x16x8xf32>
    %9 = vector.shape_cast %7 : vector<8x8xf32> to vector<1x8x8xf32>
    %10 = vector.shape_cast %9 : vector<1x8x8xf32> to vector<1x8x8xf32>
    %11 = vector.broadcast %10 : vector<1x8x8xf32> to vector<16x8x8xf32>
    "tpu.trace_start"() <{level = 10 : i32, message = "pik,pjk->pij"}> : () -> ()
    %cst_12 = arith.constant dense<0.000000e+00> : vector<16x8x16xf32>
    %12 = tpu.matmul %11, %8, %cst_12 {dimension_numbers = #tpu.dot_dimension_numbers<[2], [2], [1], [1], [0, 0, 0, 1, 1, 1], [0], [0]>} : vector<16x8x8xf32>, vector<16x16x8xf32>, vector<16x8x16xf32> -> vector<16x8x16xf32>
    "tpu.trace_stop"() : () -> ()
    %13 = vector.shape_cast %1 : vector<4x16x16xf32> to vector<1x4x16x16xf32>
    %14 = vector.shape_cast %13 : vector<1x4x16x16xf32> to vector<1x4x16x16xf32>
    %15 = vector.broadcast %14 : vector<1x4x16x16xf32> to vector<4x4x16x16xf32>
    %16 = vector.shape_cast %15 : vector<4x4x16x16xf32> to vector<16x16x16xf32>
    %17 = vector.shape_cast %5 : vector<4x16xf32> to vector<1x4x16xf32>
    %18 = vector.shape_cast %17 : vector<1x4x16xf32> to vector<1x4x16xf32>
    %19 = vector.broadcast %18 : vector<1x4x16xf32> to vector<4x4x16xf32>
    %20 = vector.shape_cast %19 : vector<4x4x16xf32> to vector<16x16xf32>
    "tpu.trace_start"() <{level = 10 : i32, message = "pij,pjk->pik"}> : () -> ()
    %cst_13 = arith.constant dense<0.000000e+00> : vector<16x8x16xf32>
    %21 = tpu.matmul %12, %16, %cst_13 {dimension_numbers = #tpu.dot_dimension_numbers<[2], [1], [1], [2], [0, 0, 0, 1, 1, 2], [0], [0]>} : vector<16x8x16xf32>, vector<16x16x16xf32>, vector<16x8x16xf32> -> vector<16x8x16xf32>
    "tpu.trace_stop"() : () -> ()
    %22 = vector.shape_cast %20 : vector<16x16xf32> to vector<16x1x16xf32>
    %23 = vector.broadcast %22 : vector<16x1x16xf32> to vector<16x8x16xf32>
    %24 = arith.mulf %21, %23 : vector<16x8x16xf32>
    "tpu.trace_start"() <{level = 10 : i32, message = "pij,pkj->pik"}> : () -> ()
    %cst_14 = arith.constant dense<0.000000e+00> : vector<16x8x8xf32>
    %25 = tpu.matmul %24, %21, %cst_14 {dimension_numbers = #tpu.dot_dimension_numbers<[2], [2], [1], [1], [0, 0, 0, 1, 1, 1], [0], [0]>} : vector<16x8x16xf32>, vector<16x8x16xf32>, vector<16x8x8xf32> -> vector<16x8x8xf32>
    "tpu.trace_stop"() : () -> ()
    %26 = vector.shape_cast %25 : vector<16x8x8xf32> to vector<4x4x8x8xf32>
    %cst_15 = arith.constant dense<0.000000e+00> : vector<4x8x8xf32>
    %27 = vector.multi_reduction <add>, %26, %cst_15 [1] : vector<4x4x8x8xf32> to vector<4x8x8xf32>
    %c0_16 = arith.constant 0 : index
    %c0_17 = arith.constant 0 : index
    %c0_18 = arith.constant 0 : index
    %c0_19 = arith.constant 0 : index
    %28 = vector.load %arg5[%c0_16, %c0_17, %c0_18, %c0_19] : memref<1x4x8x8xf32, #tpu.memory_space<vmem>>, vector<1x4x8x8xf32>
    %29 = vector.shape_cast %28 : vector<1x4x8x8xf32> to vector<4x8x8xf32>
    %30 = vector.shape_cast %27 : vector<4x8x8xf32> to vector<1x4x8x8xf32>
    tpu.vector_store %arg5[%c0_16, %c0_17, %c0_18, %c0_19], %30 {strides = array<i32>} : memref<1x4x8x8xf32, #tpu.memory_space<vmem>>, vector<1x4x8x8xf32>,
    return
  }
  func.func @transform_0(%arg0: i32) -> (i32, i32, i32, i32) {
    %c0_i32 = arith.constant 0 : i32
    %c0_i32_0 = arith.constant 0 : i32
    %c0_i32_1 = arith.constant 0 : i32
    %c0_i32_2 = arith.constant 0 : i32
    return %arg0, %c0_i32, %c0_i32_0, %c0_i32_1 : i32, i32, i32, i32
  }
  func.func @transform_1(%arg0: i32) -> (i32, i32, i32) {
    %c0_i32 = arith.constant 0 : i32
    %c0_i32_0 = arith.constant 0 : i32
    %c0_i32_1 = arith.constant 0 : i32
    return %arg0, %c0_i32, %c0_i32_0 : i32, i32, i32
  }
  func.func @transform_2(%arg0: i32) -> (i32, i32, i32, i32) {
    %c0_i32 = arith.constant 0 : i32
    %c0_i32_0 = arith.constant 0 : i32
    %c0_i32_1 = arith.constant 0 : i32
    %c0_i32_2 = arith.constant 0 : i32
    %c0_i32_3 = arith.constant 0 : i32
    return %c0_i32, %c0_i32_0, %c0_i32_1, %c0_i32_2 : i32, i32, i32, i32
  }
  func.func @transform_3(%arg0: i32) -> (i32, i32) {
    %c0_i32 = arith.constant 0 : i32
    %c0_i32_0 = arith.constant 0 : i32
    %c0_i32_1 = arith.constant 0 : i32
    return %c0_i32, %c0_i32_0 : i32, i32
  }
  func.func @transform_4(%arg0: i32) -> (i32, i32, i32, i32) {
    %c0_i32 = arith.constant 0 : i32
    %c0_i32_0 = arith.constant 0 : i32
    %c0_i32_1 = arith.constant 0 : i32
    %c0_i32_2 = arith.constant 0 : i32
    return %arg0, %c0_i32, %c0_i32_0, %c0_i32_1 : i32, i32, i32, i32
  }
}

</mosaic_0001>

<bundles_post_ra>
// kernel: tpu_custom_call.1
= control target key start
LH: loop header
LB: loop body
LE: loop exit
PB: predicated region body
PF: predicated region fallthrough
CT: control target
= control target key end

     0   :  { %9 = vsyncpa [#allocation3], 0  ;;  %s5390_s0 = inlined_call_operand.vmem [shape: f32[2,4,16,16], index: 0, kind: input, shape index: {}]   ;;  %s5391_s1 = inlined_call_operand.vmem [shape: f32[2,4,16], index: 1, kind: input, shape index: {}]   ;;  %s5392_s2 = inlined_call_operand.vmem [shape: f32[4,4,16,8], index: 2, kind: input, shape index: {}]   ;;  %s5393_s3 = inlined_call_operand.vmem [shape: f32[8,8], index: 3, kind: input, shape index: {}]   ;;  %s5394_s4 = inlined_call_operand.hbm [shape: f32[2,4,8,8], index: 4, kind: output, shape index: {}]  }
   0x1   :  { %11 = vsyncpa [#allocation3 + $0x1], 0  ;;  %s4838_s15 = smov 0   ;;  %s4840_s16 = smov 0  }
   0x2   :  { %s4842_s17 = smov 0   ;;  %s4844_s18 = smov 0  }
   0x3 LB: > { %s4859_s19 = sadd.s32 4294967295, %s4804_s18   ;;  %s4042_s20 = sadd.s32 4294967294, %s4804_s18   ;;  %s4804_s18 = sphi %s4844_s18, %s5402_s18   ;;  %s4800_s17 = sphi %s4842_s17, %s5401_s17   ;;  %s4796_s16 = sphi %s4840_s16, %s5400_s16   ;;  %s4792_s15 = sphi %s4838_s15, %s5399_s15  }
   0x4   : > { %s4863_s21 = sadd.s32 1, %s4804_s18   ;;  %s118_s22 = sadd.s32 1, %s4800_s17 }
   0x5   : > { %s115_s23 = ssub.s32 %s4804_s18, %s4863_s21  ;;  %p128_p0 = scmp.ne.s32.totalorder %s4800_s17, %s4796_s16 }
   0x6   : > { %p116_p1 = scmp.eq.s32.totalorder %s115_s23, 0  ;;  %p129_p2 = scmp.eq.s32.totalorder %s4859_s19, 1 }
   0x7   : > { %p134_p3 = scmp.ne.s32.totalorder %s4796_s16, %s4792_s15  ;;  %p135_p4 = scmp.eq.s32.totalorder %s4042_s20, 1 }
   0x8   : > { %s4874_s24 = scalar_select %p116_p1, %s4800_s17, %s118_s22  }
   0x9   : > { %p4876_p5 = por %p129_p2, %p128_p0  ;;  %p4880_p6 = por %p135_p4, %p134_p3 }
   0xa   : > { %p4045_p7 = scmp.ge.s32.totalorder %s4804_s18, 1  ;;  %p174_p8 = scmp.lt.s32.totalorder %s4804_s18, 3 }
   0xc   : > { %p175_p9 = pnand %p4045_p7, %p174_p8 }
   0xd   : > { %v223_v0 = vld [vmem:[%s5392_s2] sm:$0xff] (!%p175_p9)  ;;  %v224_v1 = vld [vmem:[%s5392_s2 + $0x8] sm:$0xff] (!%p175_p9)  ;;  %vm256_vm0 = vcmask (!%p175_p9), 64512   ;;  %v225_v2 = vld [vmem:[%s5392_s2 + $0x10] sm:$0xff] (!%p175_p9)  ;;  %v4806_v3 = vmov (!%p175_p9), 0.0|0.0   ;;  %vm4807_vm2 = vmmov (!%p175_p9), 0  }
   0xe   : > { %178 = sbr.rel (%p175_p9) target bundleno = 738 (0x2e2), region = 36  ;;  %4585 = vmatprep.subr.bf16.mxu0 (!%p175_p9), %v4806_v3  ;;  %4589 = vmatprep.subr.bf16.mxu1 (!%p175_p9), %v4806_v3  ;;  %v4586_v4 = vpack.c.bf16 (!%p175_p9), %v224_v1, %v223_v0  ;;  %vm4899_vm1 = vmpackc.low (!%p175_p9), %vm256_vm0, %vm256_vm0  ;;  %v226_v6 = vld [vmem:[%s5392_s2 + $0x18] sm:$0xff] (!%p175_p9)  ;;  %v4808_v8 = vmov (!%p175_p9), 0.0   ;;  %v227_v9 = vld [vmem:[%s5392_s2 + $0x20] sm:$0xff] (!%p175_p9)  ;;  %p204_p10 = scmp.lt.s32.totalorder (!%p175_p9), %s4859_s19, 1  ;;  %vm1476_vm3 = vcmask (!%p175_p9), 130048  }
   0xf   : > { %v4590_v7 = vpack.c.bf16 (!%p175_p9), %v226_v6, %v225_v2  ;;  %4285 = vmatprep.mubr.msk.f32.mxu0 (!%p175_p9), %vm4807_vm2, %v4808_v8  ;;  %4292 = vmatprep.mubr.msk.f32.mxu1 (!%p175_p9), %vm4807_vm2, %v4808_v8  ;;  %v228_v10 = vld [vmem:[%s5392_s2 + $0x28] sm:$0xff] (!%p175_p9)  ;;  %v229_v11 = vld [vmem:[%s5392_s2 + $0x30] sm:$0xff] (!%p175_p9)  ;;  %v230_v12 = vld [vmem:[%s5392_s2 + $0x38] sm:$0xff] (!%p175_p9)  ;;  %s4152_s12 = sshll.u32 (!%p175_p9), %s4859_s19, 9 }
  0x10   : > { %4588 = vmatpush3.bf16.xpose.msk.msra.mxu0 (!%p175_p9), %vm4899_vm1, %v4586_v4  ;;  %v4931_v13 = vld [vmem:[%s5393_s3] sm:$0xff] (!%p175_p9)  ;;  %v4594_v14 = vpack.c.bf16 (!%p175_p9), %v228_v10, %v227_v9  ;;  %v4598_v15 = vpack.c.bf16 (!%p175_p9), %v230_v12, %v229_v11  ;;  %v232_v17 = vld [vmem:[%s5392_s2 + $0x48] sm:$0xff] (!%p175_p9)  ;;  %v233_v18 = vld [vmem:[%s5392_s2 + $0x50] sm:$0xff] (!%p175_p9)  ;;  %s5343_s20 = scalar_lea.hbm (!%p175_p9), %s5394_s4, %s4152_s12 }
  0x11   : > { %4592 = vmatpush3.bf16.xpose.msk.msra.mxu1 (!%p175_p9), %vm4899_vm1, %v4590_v7  ;;  %4593 = vmatprep.subr.bf16.mxu0 (!%p175_p9), %v4806_v3  ;;  %v231_v16 = vld [vmem:[%s5392_s2 + $0x40] sm:$0xff] (!%p175_p9)  ;;  %v234_v19 = vld [vmem:[%s5392_s2 + $0x58] sm:$0xff] (!%p175_p9)  ;;  %v236_v23 = vld [vmem:[%s5392_s2 + $0x68] sm:$0xff] (!%p175_p9) }
  0x12   : > { %4597 = vmatprep.subr.bf16.mxu1 (!%p175_p9), %v4806_v3  ;;  %v4602_v20 = vpack.c.bf16 (!%p175_p9), %v232_v17, %v231_v16  ;;  %v4606_v21 = vpack.c.bf16 (!%p175_p9), %v234_v19, %v233_v18  ;;  %v235_v22 = vld [vmem:[%s5392_s2 + $0x60] sm:$0xff] (!%p175_p9)  ;;  %v237_v24 = vld [vmem:[%s5392_s2 + $0x70] sm:$0xff] (!%p175_p9)  ;;  %v238_v25 = vld [vmem:[%s5392_s2 + $0x78] sm:$0xff] (!%p175_p9) }
  0x13   : > { %v4610_v26 = vpack.c.bf16 (!%p175_p9), %v236_v23, %v235_v22  ;;  %v4614_v27 = vpack.c.bf16 (!%p175_p9), %v238_v25, %v237_v24  ;;  %v239_v28 = vld [vmem:[%s5392_s2 + $0x80] sm:$0xff] (!%p175_p9)  ;;  %v240_v29 = vld [vmem:[%s5392_s2 + $0x88] sm:$0xff] (!%p175_p9)  ;;  %v241_v30 = vld [vmem:[%s5392_s2 + $0x90] sm:$0xff] (!%p175_p9) }
  0x14   : > { %v242_v31 = vld [vmem:[%s5392_s2 + $0x98] sm:$0xff] (!%p175_p9)  ;;  %v4618_v32 = vpack.c.bf16 (!%p175_p9), %v240_v29, %v239_v28  ;;  %v243_v34 = vld [vmem:[%s5392_s2 + $0xa0] sm:$0xff] (!%p175_p9)  ;;  %v244_v35 = vld [vmem:[%s5392_s2 + $0xa8] sm:$0xff] (!%p175_p9) }
  0x15   : > { %v4622_v33 = vpack.c.bf16 %v242_v31, %v241_v30  ;;  %v245_v36 = vld [vmem:[%s5392_s2 + $0xb0] sm:$0xff]  ;;  %v246_v37 = vld [vmem:[%s5392_s2 + $0xb8] sm:$0xff]  ;;  %v4626_v38 = vpack.c.bf16 %v244_v35, %v243_v34  ;;  %v247_v40 = vld [vmem:[%s5392_s2 + $0xc0] sm:$0xff]  ;;  %s5067_s8 = scalar_select %p204_p10, %s4859_s19, 1  ;;  %v2649_v35 = vlaneseq }
  0x16   : > { %v4630_v39 = vpack.c.bf16 %v246_v37, %v245_v36  ;;  %v248_v41 = vld [vmem:[%s5392_s2 + $0xc8] sm:$0xff]  ;;  %v249_v42 = vld [vmem:[%s5392_s2 + $0xd0] sm:$0xff]  ;;  %v250_v43 = vld [vmem:[%s5392_s2 + $0xd8] sm:$0xff] }
  0x17   : > { %4286 = vmatmul.mubr.msk.f32.vlgmr.msra.gmra.mrb[0].mxu0 %vm256_vm0, %v4931_v13  ;;  %v4634_v44 = vpack.c.bf16 %v248_v41, %v247_v40  ;;  %v4638_v45 = vpack.c.bf16 %v250_v43, %v249_v42  ;;  %v251_v46 = vld [vmem:[%s5392_s2 + $0xe0] sm:$0xff]  ;;  %v252_v47 = vld [vmem:[%s5392_s2 + $0xe8] sm:$0xff]  ;;  %v253_v48 = vld [vmem:[%s5392_s2 + $0xf0] sm:$0xff]  ;;  %s4151_s23 = sshll.u32 %s5067_s8, 6  ;;  %s4049_s30 = sshll.u32 %s5067_s8, 2  ;;  %v2650_v37 = vshrl.u32 %v2649_v35, 7 }
  0x18   : > { %4293 = vmatmul.mubr.msk.f32.vlgmr.msra.gmra.mrb[0].mxu1 %vm256_vm0, %v4931_v13  ;;  %4596 = vmatpush3.bf16.xpose.msk.msra.mxu0 %vm4899_vm1, %v4594_v14  ;;  %v254_v49 = vld [vmem:[%s5392_s2 + $0xf8] sm:$0xff]  ;;  %v4642_v50 = vpack.c.bf16 %v252_v47, %v251_v46  ;;  %s208_s29 = scalar_lea.vmem %s5390_s0, %s4151_s23  ;;  %s212_s7 = scalar_lea.vmem %s5391_s1, %s4049_s30 }
  0x19   : > { %4600 = vmatpush3.bf16.xpose.msk.msra.mxu1 %vm4899_vm1, %v4598_v15  ;;  %4299 = vmatprep.mubr.msk.f32.mxu0 %vm4807_vm2, %v4808_v8  ;;  %v4646_v51 = vpack.c.bf16 %v254_v49, %v253_v48  ;;  %v213_v52 = vld [vmem:[%s208_s29] sm:$0xff]  ;;  %v214_v53 = vld [vmem:[%s208_s29 + $0x8] sm:$0xff]  ;;  %v215_v54 = vld [vmem:[%s208_s29 + $0x10] sm:$0xff]  ;;  %s201_s8 = sand.u32 1, %s4796_s16   ;;  %s4810_s23 = smov [#allocation2]  }
  0x1a   : > { %4306 = vmatprep.mubr.msk.f32.mxu1 %vm4807_vm2, %v4808_v8  ;;  %4601 = vmatprep.subr.bf16.mxu0 %v4806_v3  ;;  %v216_v55 = vld [vmem:[%s208_s29 + $0x18] sm:$0xff]  ;;  %v5111_v56 = vpack.c.bf16 %v214_v53, %v213_v52  ;;  %v217_v58 = vld [vmem:[%s208_s29 + $0x20] sm:$0xff]  ;;  %v218_v59 = vld [vmem:[%s208_s29 + $0x28] sm:$0xff]  ;;  %s4046_s9 = sshll.u32 %s201_s8, 5  ;;  %s5349_s22 = scalar_lea.sflag [#allocation3], %s201_s8 }
  0x1b   : > { %4605 = vmatprep.subr.bf16.mxu1 %v4806_v3  ;;  %v5113_v57 = vpack.c.bf16 %v216_v55, %v215_v54  ;;  %v219_v60 = vld [vmem:[%s208_s29 + $0x30] sm:$0xff]  ;;  %v220_v61 = vld [vmem:[%s208_s29 + $0x38] sm:$0xff]  ;;  %v5127_v62 = vpack.c.bf16 %v218_v59, %v217_v58  ;;  %s5316_s10 = scalar_lea.vmem [#allocation2], %s4046_s9  ;;  %s4746_s27 = sshll.u32 %s4810_s23, 4  ;;  %s4747_s27 = int_to_ptr.vmem [resolvable:$false] %s4746_s27 }
  0x1c   : > { %v5129_v63 = vpack.c.bf16 %v220_v61, %v219_v60  ;;  %s3968_s11 = sshll.u32 %s5316_s10, 4  ;;  %s4748_s28 = scalar_lea.vmem %s4747_s27, 1024  ;;  %s5338_s11 = int_to_ptr.vmem [resolvable:$true] %s3968_s11 }
  0x1d   : > { %s4742_s19 = scalar_lea.vmem %s5338_s11, 512  ;;  %p4749_p0 = scmp.lt.s32.totalorder %s5338_s11, %s4747_s27 }
  0x1e   : > { %p4743_p11 = scmp.ne.s32.totalorder %s5338_s11, %s4742_s19  ;;  %p4750_p1 = scmp.lt.s32.totalorder %s4748_s28, %s4742_s19 }
  0x1f   : > { %4300 = vmatmul.mubr.msk.f32.vlgmr.msra.gmra.mrb[2].mxu0 %vm256_vm0, %v4931_v13 }
  0x20   : > { %4307 = vmatmul.mubr.msk.f32.vlgmr.msra.gmra.mrb[2].mxu1 %vm256_vm0, %v4931_v13  ;;  %4604 = vmatpush3.bf16.xpose.msk.msra.mxu0 %vm4899_vm1, %v4602_v20  ;;  %p4744_p12 = pnand %p4743_p11, %p4876_p5  ;;  %p4751_p2 = por %p4750_p1, %p4749_p0 }
  0x21   : > { %4608 = vmatpush3.bf16.xpose.msk.msra.mxu1 %vm4899_vm1, %v4606_v21  ;;  %4313 = vmatprep.mubr.msk.f32.mxu0 %vm4807_vm2, %v4808_v8 }
  0x22   : > { %4320 = vmatprep.mubr.msk.f32.mxu1 %vm4807_vm2, %v4808_v8  ;;  %4609 = vmatprep.subr.bf16.mxu0 %v4806_v3  ;;  %p4745_p13 = pneg %p4744_p12 }
  0x23   : > { %4613 = vmatprep.subr.bf16.mxu1 %v4806_v3 }
  0x24   : > { %p4752_p3 = pnand %p4751_p2, %p4745_p13 }
  0x27   : > { %4314 = vmatmul.mubr.msk.f32.vlgmr.msra.gmra.mrb[4].mxu0 %vm256_vm0, %v4931_v13 }
  0x28   : > { %4321 = vmatmul.mubr.msk.f32.vlgmr.msra.gmra.mrb[4].mxu1 %vm256_vm0, %v4931_v13  ;;  %4612 = vmatpush3.bf16.xpose.msk.msra.mxu0 %vm4899_vm1, %v4610_v26 }
  0x29   : > { %4616 = vmatpush3.bf16.xpose.msk.msra.mxu1 %vm4899_vm1, %v4614_v27  ;;  %4327 = vmatprep.mubr.msk.f32.mxu0 %vm4807_vm2, %v4808_v8 }
  0x2a   : > { %4334 = vmatprep.mubr.msk.f32.mxu1 %vm4807_vm2, %v4808_v8  ;;  %4617 = vmatprep.subr.bf16.mxu0 %v4806_v3 }
  0x2b   : > { %4621 = vmatprep.subr.bf16.mxu1 %v4806_v3 }
  0x2f   : > { %4328 = vmatmul.mubr.msk.f32.vlgmr.msra.gmra.mrb[6].mxu0 %vm256_vm0, %v4931_v13 }
  0x30   : > { %4335 = vmatmul.mubr.msk.f32.vlgmr.msra.gmra.mrb[6].mxu1 %vm256_vm0, %v4931_v13  ;;  %4620 = vmatpush3.bf16.xpose.msk.msra.mxu0 %vm4899_vm1, %v4618_v32 }
  0x31   : > { %4624 = vmatpush3.bf16.xpose.msk.msra.mxu1 %vm4899_vm1, %v4622_v33  ;;  %4341 = vmatprep.mubr.msk.f32.mxu0 %vm4807_vm2, %v4808_v8  ;;  %v4809_v33 = vmov 1966171168  }
  0x32   : > { %4348 = vmatprep.mubr.msk.f32.mxu1 %vm4807_vm2, %v4808_v8  ;;  %4625 = vmatprep.subr.bf16.mxu0 %v4806_v3  ;;  %v2647_v34 = vunpack.c.l.s4 %v4809_v33 }
  0x33   : > { %4629 = vmatprep.subr.bf16.mxu1 %v4806_v3 }
  0x34   : > { %v2648_v36 = vunpack.c.0.s8 %v2647_v34 }
  0x36   : > { %v2651_v40 = vsub.s32 %v2648_v36, %v2650_v37 }
  0x37   : > { %4342 = vmatmul.mubr.msk.f32.vlgmr.msra.gmra.mrb[8].mxu0 %vm256_vm0, %v4931_v13 }
  0x38   : > { %4349 = vmatmul.mubr.msk.f32.vlgmr.msra.gmra.mrb[8].mxu1 %vm256_vm0, %v4931_v13  ;;  %4628 = vmatpush3.bf16.xpose.msk.msra.mxu0 %vm4899_vm1, %v4626_v38  ;;  %v221_v38 = vld [vmem:[%s212_s7] sm:$0xf] }
  0x39   : > { %4632 = vmatpush3.bf16.xpose.msk.msra.mxu1 %vm4899_vm1, %v4630_v39  ;;  %4355 = vmatprep.mubr.msk.f32.mxu0 %vm4807_vm2, %v4808_v8  ;;  %v222_v39 = vmax.f32 %v221_v38, 0.0001 }
  0x3a   : > { %4362 = vmatprep.mubr.msk.f32.mxu1 %vm4807_vm2, %v4808_v8  ;;  %4633 = vmatprep.subr.bf16.mxu0 %v4806_v3 }
  0x3b   : > { %4637 = vmatprep.subr.bf16.mxu1 %v4806_v3  ;;  %v2652_v41 = vrot.slane %v222_v39, %v2651_v40 }
  0x3d   : > { %v2653_v42 = vcombine.high %v2652_v41, %v2652_v41  ;;  %v2660_v43 = vrot.slane %v2652_v41, %v2651_v40 }
  0x3f   : > { %4356 = vmatmul.mubr.msk.f32.vlgmr.msra.gmra.mrb[10].mxu0 %vm256_vm0, %v4931_v13  ;;  %v2668_v52 = vcombine.high %v2660_v43, %v2660_v43 }
  0x40   : > { %4363 = vmatmul.mubr.msk.f32.vlgmr.msra.gmra.mrb[10].mxu1 %vm256_vm0, %v4931_v13  ;;  %4636 = vmatpush3.bf16.xpose.msk.msra.mxu0 %vm4899_vm1, %v4634_v44  ;;  %v2672_v44 = vsub.s32 0, %v2650_v37 }
  0x41   : > { %4640 = vmatpush3.bf16.xpose.msk.msra.mxu1 %vm4899_vm1, %v4638_v45  ;;  %4369 = vmatprep.mubr.msk.f32.mxu0 %vm4807_vm2, %v4808_v8  ;;  %v2667_v45 = vrot.slane %v2653_v42, %v2651_v40 }
  0x42   : > { %4376 = vmatprep.mubr.msk.f32.mxu1 %vm4807_vm2, %v4808_v8  ;;  %4641 = vmatprep.subr.bf16.mxu0 %v4806_v3  ;;  %v5211_v46 = vrot.slane %v2660_v43, %v2672_v44 }
  0x43   : > { %4645 = vmatprep.subr.bf16.mxu1 %v4806_v3  ;;  %v5213_v47 = vrot.slane %v2667_v45, %v2672_v44  ;;  %v2669_v55 = vcombine.high %v2667_v45, %v2667_v45 }
  0x47   : > { %4370 = vmatmul.mubr.msk.f32.vlgmr.msra.gmra.mrb[12].mxu0 %vm256_vm0, %v4931_v13 }
  0x48   : > { %4377 = vmatmul.mubr.msk.f32.vlgmr.msra.gmra.mrb[12].mxu1 %vm256_vm0, %v4931_v13  ;;  %4644 = vmatpush3.bf16.xpose.msk.msra.mxu0 %vm4899_vm1, %v4642_v50 }
  0x49   : > { %4648 = vmatpush3.bf16.xpose.msk.msra.mxu1 %vm4899_vm1, %v4646_v51  ;;  %4383 = vmatprep.mubr.msk.f32.mxu0 %vm4807_vm2, %v4808_v8 }
  0x4a   : > { %4390 = vmatprep.mubr.msk.f32.mxu1 %vm4807_vm2, %v4808_v8  ;;  %4649 = vmatprep.subr.bf16.mxu0 %v4806_v3 }
  0x4b   : > { %4652 = vmatprep.subr.bf16.mxu1 %v4806_v3 }
  0x4f   : > { %4384 = vmatmul.mubr.msk.f32.vlgmr.msra.gmra.mrb[14].mxu0 %vm256_vm0, %v4931_v13 }
  0x50   : > { %4391 = vmatmul.mubr.msk.f32.vlgmr.msra.gmra.mrb[14].mxu1 %vm256_vm0, %v4931_v13  ;;  %4651 = vmatpush3.bf16.msra.mxu0 %v5111_v56 }
  0x51   : > { %4654 = vmatpush3.bf16.msra.mxu1 %v5113_v57  ;;  %4397 = vmatprep.mubr.msk.f32.mxu0 %vm4807_vm2, %v4808_v8 }
  0x52   : > { %4404 = vmatprep.mubr.msk.f32.mxu1 %vm4807_vm2, %v4808_v8  ;;  %4655 = vmatprep.subr.bf16.mxu0 %v4806_v3 }
  0x53   : > { %4658 = vmatprep.subr.bf16.mxu1 %v4806_v3 }
  0xea   : > { %v332_v0 = vpop.f32.mrb[0].mxu0 }
  0xeb   : > { %v408_v1 = vpop.f32.mrb[0].mxu1  ;;  %v4287_v2 = vpop.f32.mrb[1].mxu0  ;;  %4398 = vmatmul.mubr.msk.f32.vlgmr.msra.gmra.mrb[16].mxu0 %vm1476_vm3, %v332_v0 }
  0xec   : > { %4405 = vmatmul.mubr.msk.f32.vlgmr.msra.gmra.mrb[16].mxu1 %vm1476_vm3, %v408_v1  ;;  %v4294_v4 = vpop.f32.mrb[1].mxu1  ;;  %4657 = vmatpush3.bf16.msra.mxu0 %v5127_v62 }
  0xed   : > { %4660 = vmatpush3.bf16.msra.mxu1 %v5129_v63  ;;  %4411 = vmatprep.mubr.msk.f32.mxu0 %vm4807_vm2, %v4808_v8 }
  0xee   : > { %4418 = vmatprep.mubr.msk.f32.mxu1 %vm4807_vm2, %v4808_v8  ;;  %4661 = vmatprep.subr.bf16.mxu0 %v4806_v3 }
  0xef   : > { %4664 = vmatprep.subr.bf16.mxu1 %v4806_v3 }
  0xf2   : > { %v484_v5 = vpop.f32.mrb[2].mxu0 }
  0xf3   : > { %v4301_v6 = vpop.f32.mrb[3].mxu0  ;;  %v560_v7 = vpop.f32.mrb[2].mxu1  ;;  %4412 = vmatmul.mubr.msk.f32.vlgmr.msra.gmra.mrb[18].mxu0 %vm1476_vm3, %v484_v5 }
  0xf4   : > { %4419 = vmatmul.mubr.msk.f32.vlgmr.msra.gmra.mrb[18].mxu1 %vm1476_vm3, %v560_v7  ;;  %v4308_v9 = vpop.f32.mrb[3].mxu1  ;;  %4663 = vmatpush3.bf16.msra.mxu0 %v5111_v56 }
  0xf5   : > { %4666 = vmatpush3.bf16.msra.mxu1 %v5113_v57  ;;  %4425 = vmatprep.mubr.msk.f32.mxu0 %vm4807_vm2, %v4808_v8 }
  0xf6   : > { %4432 = vmatprep.mubr.msk.f32.mxu1 %vm4807_vm2, %v4808_v8  ;;  %4667 = vmatprep.subr.bf16.mxu0 %v4806_v3 }
  0xf7   : > { %4670 = vmatprep.subr.bf16.mxu1 %v4806_v3 }
  0xfa   : > { %v636_v10 = vpop.f32.mrb[4].mxu0 }
  0xfb   : > { %v712_v11 = vpop.f32.mrb[4].mxu1  ;;  %v4315_v12 = vpop.f32.mrb[5].mxu0  ;;  %4426 = vmatmul.mubr.msk.f32.vlgmr.msra.gmra.mrb[20].mxu0 %vm1476_vm3, %v636_v10 }
  0xfc   : > { %4433 = vmatmul.mubr.msk.f32.vlgmr.msra.gmra.mrb[20].mxu1 %vm1476_vm3, %v712_v11  ;;  %v4322_v13 = vpop.f32.mrb[5].mxu1  ;;  %4669 = vmatpush3.bf16.msra.mxu0 %v5127_v62 }
  0xfd   : > { %4672 = vmatpush3.bf16.msra.mxu1 %v5129_v63  ;;  %4439 = vmatprep.mubr.msk.f32.mxu0 %vm4807_vm2, %v4808_v8 }
  0xfe   : > { %4446 = vmatprep.mubr.msk.f32.mxu1 %vm4807_vm2, %v4808_v8  ;;  %4673 = vmatprep.subr.bf16.mxu0 %v4806_v3 }
  0xff   : > { %4676 = vmatprep.subr.bf16.mxu1 %v4806_v3 }
 0x102   : > { %v788_v14 = vpop.f32.mrb[6].mxu0 }
 0x103   : > { %v4329_v15 = vpop.f32.mrb[7].mxu0  ;;  %v864_v16 = vpop.f32.mrb[6].mxu1  ;;  %4440 = vmatmul.mubr.msk.f32.vlgmr.msra.gmra.mrb[22].mxu0 %vm1476_vm3, %v788_v14 }
 0x104   : > { %4447 = vmatmul.mubr.msk.f32.vlgmr.msra.gmra.mrb[22].mxu1 %vm1476_vm3, %v864_v16  ;;  %v4336_v17 = vpop.f32.mrb[7].mxu1  ;;  %4675 = vmatpush3.bf16.msra.mxu0 %v5111_v56 }
 0x105   : > { %4678 = vmatpush3.bf16.msra.mxu1 %v5113_v57  ;;  %4453 = vmatprep.mubr.msk.f32.mxu0 %vm4807_vm2, %v4808_v8 }
 0x106   : > { %4460 = vmatprep.mubr.msk.f32.mxu1 %vm4807_vm2, %v4808_v8  ;;  %4679 = vmatprep.subr.bf16.mxu0 %v4806_v3 }
 0x107   : > { %4682 = vmatprep.subr.bf16.mxu1 %v4806_v3 }
 0x10a   : > { %v940_v18 = vpop.f32.mrb[8].mxu0 }
 0x10b   : > { %v1016_v19 = vpop.f32.mrb[8].mxu1  ;;  %v4343_v20 = vpop.f32.mrb[9].mxu0  ;;  %4454 = vmatmul.mubr.msk.f32.vlgmr.msra.gmra.mrb[24].mxu0 %vm1476_vm3, %v940_v18 }
 0x10c   : > { %4461 = vmatmul.mubr.msk.f32.vlgmr.msra.gmra.mrb[24].mxu1 %vm1476_vm3, %v1016_v19  ;;  %v4350_v21 = vpop.f32.mrb[9].mxu1  ;;  %4681 = vmatpush3.bf16.msra.mxu0 %v5127_v62 }
 0x10d   : > { %4684 = vmatpush3.bf16.msra.mxu1 %v5129_v63  ;;  %4467 = vmatprep.mubr.msk.f32.mxu0 %vm4807_vm2, %v4808_v8 }
 0x10e   : > { %4474 = vmatprep.mubr.msk.f32.mxu1 %vm4807_vm2, %v4808_v8  ;;  %4685 = vmatprep.subr.bf16.mxu0 %v4806_v3 }
 0x10f   : > { %4688 = vmatprep.subr.bf16.mxu1 %v4806_v3 }
 0x112   : > { %v1092_v22 = vpop.f32.mrb[10].mxu0 }
 0x113   : > { %v4357_v23 = vpop.f32.mrb[11].mxu0  ;;  %v1168_v24 = vpop.f32.mrb[10].mxu1  ;;  %4468 = vmatmul.mubr.msk.f32.vlgmr.msra.gmra.mrb[26].mxu0 %vm1476_vm3, %v1092_v22 }
 0x114   : > { %4475 = vmatmul.mubr.msk.f32.vlgmr.msra.gmra.mrb[26].mxu1 %vm1476_vm3, %v1168_v24  ;;  %v4364_v25 = vpop.f32.mrb[11].mxu1  ;;  %4687 = vmatpush3.bf16.msra.mxu0 %v5111_v56  ;;  %v5223_v56 = vrot.slane %v2668_v52, %v2672_v44 }
 0x115   : > { %4690 = vmatpush3.bf16.msra.mxu1 %v5113_v57  ;;  %4481 = vmatprep.mubr.msk.f32.mxu0 %vm4807_vm2, %v4808_v8  ;;  %v5227_v57 = vrot.slane %v2669_v55, %v2672_v44 }
 0x116   : > { %4488 = vmatprep.mubr.msk.f32.mxu1 %vm4807_vm2, %v4808_v8  ;;  %4691 = vmatprep.subr.bf16.mxu0 %v4806_v3 }
 0x117   : > { %4694 = vmatprep.subr.bf16.mxu1 %v4806_v3 }
 0x11a   : > { %v1244_v26 = vpop.f32.mrb[12].mxu0 }
 0x11b   : > { %v1320_v27 = vpop.f32.mrb[12].mxu1  ;;  %v4371_v28 = vpop.f32.mrb[13].mxu0  ;;  %4482 = vmatmul.mubr.msk.f32.vlgmr.msra.gmra.mrb[28].mxu0 %vm1476_vm3, %v1244_v26 }
 0x11c   : > { %4489 = vmatmul.mubr.msk.f32.vlgmr.msra.gmra.mrb[28].mxu1 %vm1476_vm3, %v1320_v27  ;;  %v4378_v29 = vpop.f32.mrb[13].mxu1  ;;  %4693 = vmatpush3.bf16.msra.mxu0 %v5127_v62 }
 0x11d   : > { %4696 = vmatpush3.bf16.msra.mxu1 %v5129_v63  ;;  %4495 = vmatprep.mubr.msk.f32.mxu0 %vm4807_vm2, %v4808_v8 }
 0x11e   : > { %4502 = vmatprep.mubr.msk.f32.mxu1 %vm4807_vm2, %v4808_v8  ;;  %4505 = vmatprep.subr.mxu0 %v4808_v8 }
 0x11f   : > { %4510 = vmatprep.subr.mxu1 %v4808_v8 }
 0x122   : > { %v1396_v3 = vpop.f32.mrb[14].mxu0 }
 0x123   : > { %v1472_v30 = vpop.f32.mrb[14].mxu1  ;;  %v4385_v31 = vpop.f32.mrb[15].mxu0  ;;  %4496 = vmatmul.mubr.msk.f32.vlgmr.msra.gmra.mrb[30].mxu0 %vm1476_vm3, %v1396_v3 }
 0x124   : > { %4503 = vmatmul.mubr.msk.f32.vlgmr.msra.gmra.mrb[30].mxu1 %vm1476_vm3, %v1472_v30  ;;  %v4392_v32 = vpop.f32.mrb[15].mxu1  ;;  %4507 = vmatprep.mubr.msk.f32.mxu0 %vm4807_vm2, %v4808_v8 }
 0x125   : > { %4512 = vmatprep.mubr.msk.f32.mxu1 %vm4807_vm2, %v4808_v8 }
 0x1be   : > { %v1546_v48 = vpop.f32.mrb[16].mxu0 }
 0x1bf   : > { %v2690_v49 = vmul.f32 %v5211_v46, %v1546_v48  ;;  %v1619_v50 = vpop.f32.mrb[16].mxu1  ;;  %v4399_v51 = vpop.f32.mrb[17].mxu0  ;;  %4506 = vmatpush3.xpose.msk.msra.mxu0 %vm1476_vm3, %v1546_v48 }
 0x1c0   : > { %v2691_v53 = vmul.f32 %v5213_v47, %v1619_v50  ;;  %4511 = vmatpush3.xpose.msk.msra.mxu1 %vm1476_vm3, %v1619_v50  ;;  %v4406_v54 = vpop.f32.mrb[17].mxu1  ;;  %4515 = vmatprep.subr.mxu0 %v4808_v8 }
 0x1c1   : > { %4520 = vmatprep.subr.mxu1 %v4808_v8 }
 0x1c2   : > { %4508 = vmatmul.mubr.msk.f32.vlgmr.msra.gmra.mrb[32].mxu0 %vm1476_vm3, %v2690_v49 }
 0x1c3   : > { %4513 = vmatmul.mubr.msk.f32.vlgmr.msra.gmra.mrb[32].mxu1 %vm1476_vm3, %v2691_v53  ;;  %4517 = vmatprep.mubr.msk.f32.mxu0 %vm4807_vm2, %v4808_v8 }
 0x1c4   : > { %4522 = vmatprep.mubr.msk.f32.mxu1 %vm4807_vm2, %v4808_v8 }
 0x1c6   : > { %v1692_v58 = vpop.f32.mrb[18].mxu0 }
 0x1c7   : > { %v2692_v59 = vmul.f32 %v5223_v56, %v1692_v58  ;;  %v4413_v60 = vpop.f32.mrb[19].mxu0  ;;  %v1765_v61 = vpop.f32.mrb[18].mxu1  ;;  %4516 = vmatpush3.xpose.msk.msra.mxu0 %vm1476_vm3, %v1692_v58 }
 0x1c8   : > { %v2693_v62 = vmul.f32 %v5227_v57, %v1765_v61  ;;  %4521 = vmatpush3.xpose.msk.msra.mxu1 %vm1476_vm3, %v1765_v61  ;;  %v4420_v63 = vpop.f32.mrb[19].mxu1  ;;  %4525 = vmatprep.subr.mxu0 %v4808_v8 }
 0x1c9   : > { %4530 = vmatprep.subr.mxu1 %v4808_v8 }
 0x1ca   : > { %4518 = vmatmul.mubr.msk.f32.vlgmr.msra.gmra.mrb[34].mxu0 %vm1476_vm3, %v2692_v59 }
 0x1cb   : > { %4523 = vmatmul.mubr.msk.f32.vlgmr.msra.gmra.mrb[34].mxu1 %vm1476_vm3, %v2693_v62  ;;  %4527 = vmatprep.mubr.msk.f32.mxu0 %vm4807_vm2, %v4808_v8 }
 0x1cc   : > { %4532 = vmatprep.mubr.msk.f32.mxu1 %vm4807_vm2, %v4808_v8 }
 0x1ce   : > { %v1838_v0 = vpop.f32.mrb[20].mxu0 }
 0x1cf   : > { %v2694_v1 = vmul.f32 %v5211_v46, %v1838_v0  ;;  %v1911_v2 = vpop.f32.mrb[20].mxu1  ;;  %v4427_v4 = vpop.f32.mrb[21].mxu0  ;;  %4526 = vmatpush3.xpose.msk.msra.mxu0 %vm1476_vm3, %v1838_v0 }
 0x1d0   : > { %v2695_v5 = vmul.f32 %v5213_v47, %v1911_v2  ;;  %4531 = vmatpush3.xpose.msk.msra.mxu1 %vm1476_vm3, %v1911_v2  ;;  %v4434_v6 = vpop.f32.mrb[21].mxu1  ;;  %4535 = vmatprep.subr.mxu0 %v4808_v8 }
 0x1d1   : > { %4540 = vmatprep.subr.mxu1 %v4808_v8 }
 0x1d2   : > { %4528 = vmatmul.mubr.msk.f32.vlgmr.msra.gmra.mrb[36].mxu0 %vm1476_vm3, %v2694_v1 }
 0x1d3   : > { %4533 = vmatmul.mubr.msk.f32.vlgmr.msra.gmra.mrb[36].mxu1 %vm1476_vm3, %v2695_v5  ;;  %4537 = vmatprep.mubr.msk.f32.mxu0 %vm4807_vm2, %v4808_v8 }
 0x1d4   : > { %4542 = vmatprep.mubr.msk.f32.mxu1 %vm4807_vm2, %v4808_v8 }
 0x1d6   : > { %v1984_v7 = vpop.f32.mrb[22].mxu0 }
 0x1d7   : > { %v2696_v9 = vmul.f32 %v5223_v56, %v1984_v7  ;;  %v4441_v10 = vpop.f32.mrb[23].mxu0  ;;  %v2057_v11 = vpop.f32.mrb[22].mxu1  ;;  %4536 = vmatpush3.xpose.msk.msra.mxu0 %vm1476_vm3, %v1984_v7 }
 0x1d8   : > { %v2697_v12 = vmul.f32 %v5227_v57, %v2057_v11  ;;  %4541 = vmatpush3.xpose.msk.msra.mxu1 %vm1476_vm3, %v2057_v11  ;;  %v4448_v13 = vpop.f32.mrb[23].mxu1  ;;  %4545 = vmatprep.subr.mxu0 %v4808_v8 }
 0x1d9   : > { %4550 = vmatprep.subr.mxu1 %v4808_v8 }
 0x1da   : > { %4538 = vmatmul.mubr.msk.f32.vlgmr.msra.gmra.mrb[38].mxu0 %vm1476_vm3, %v2696_v9 }
 0x1db   : > { %4543 = vmatmul.mubr.msk.f32.vlgmr.msra.gmra.mrb[38].mxu1 %vm1476_vm3, %v2697_v12  ;;  %4547 = vmatprep.mubr.msk.f32.mxu0 %vm4807_vm2, %v4808_v8 }
 0x1dc   : > { %4552 = vmatprep.mubr.msk.f32.mxu1 %vm4807_vm2, %v4808_v8 }
 0x1de   : > { %v2130_v14 = vpop.f32.mrb[24].mxu0 }
 0x1df   : > { %v2698_v15 = vmul.f32 %v5211_v46, %v2130_v14  ;;  %v2203_v16 = vpop.f32.mrb[24].mxu1  ;;  %v4455_v17 = vpop.f32.mrb[25].mxu0  ;;  %4546 = vmatpush3.xpose.msk.msra.mxu0 %vm1476_vm3, %v2130_v14 }
 0x1e0   : > { %v2699_v18 = vmul.f32 %v5213_v47, %v2203_v16  ;;  %4551 = vmatpush3.xpose.msk.msra.mxu1 %vm1476_vm3, %v2203_v16  ;;  %v4462_v19 = vpop.f32.mrb[25].mxu1  ;;  %4555 = vmatprep.subr.mxu0 %v4808_v8 }
 0x1e1   : > { %4560 = vmatprep.subr.mxu1 %v4808_v8 }
 0x1e2   : > { %4548 = vmatmul.mubr.msk.f32.vlgmr.msra.gmra.mrb[40].mxu0 %vm1476_vm3, %v2698_v15 }
 0x1e3   : > { %4553 = vmatmul.mubr.msk.f32.vlgmr.msra.gmra.mrb[40].mxu1 %vm1476_vm3, %v2699_v18  ;;  %4557 = vmatprep.mubr.msk.f32.mxu0 %vm4807_vm2, %v4808_v8 }
 0x1e4   : > { %4562 = vmatprep.mubr.msk.f32.mxu1 %vm4807_vm2, %v4808_v8 }
 0x1e6   : > { %v2276_v20 = vpop.f32.mrb[26].mxu0 }
 0x1e7   : > { %v2700_v21 = vmul.f32 %v5223_v56, %v2276_v20  ;;  %v4469_v22 = vpop.f32.mrb[27].mxu0  ;;  %v2349_v23 = vpop.f32.mrb[26].mxu1  ;;  %4556 = vmatpush3.xpose.msk.msra.mxu0 %vm1476_vm3, %v2276_v20 }
 0x1e8   : > { %v2701_v24 = vmul.f32 %v5227_v57, %v2349_v23  ;;  %4561 = vmatpush3.xpose.msk.msra.mxu1 %vm1476_vm3, %v2349_v23  ;;  %v4476_v25 = vpop.f32.mrb[27].mxu1  ;;  %4565 = vmatprep.subr.mxu0 %v4808_v8 }
 0x1e9   : > { %4570 = vmatprep.subr.mxu1 %v4808_v8 }
 0x1ea   : > { %4558 = vmatmul.mubr.msk.f32.vlgmr.msra.gmra.mrb[42].mxu0 %vm1476_vm3, %v2700_v21 }
 0x1eb   : > { %4563 = vmatmul.mubr.msk.f32.vlgmr.msra.gmra.mrb[42].mxu1 %vm1476_vm3, %v2701_v24  ;;  %4567 = vmatprep.mubr.msk.f32.mxu0 %vm4807_vm2, %v4808_v8 }
 0x1ec   : > { %4572 = vmatprep.mubr.msk.f32.mxu1 %vm4807_vm2, %v4808_v8 }
 0x1ee   : > { %v2422_v26 = vpop.f32.mrb[28].mxu0 }
 0x1ef   : > { %v2702_v27 = vmul.f32 %v5211_v46, %v2422_v26  ;;  %v2495_v28 = vpop.f32.mrb[28].mxu1  ;;  %v4483_v29 = vpop.f32.mrb[29].mxu0  ;;  %4566 = vmatpush3.xpose.msk.msra.mxu0 %vm1476_vm3, %v2422_v26 }
 0x1f0   : > { %v2703_v3 = vmul.f32 %v5213_v47, %v2495_v28  ;;  %4571 = vmatpush3.xpose.msk.msra.mxu1 %vm1476_vm3, %v2495_v28  ;;  %v4490_v30 = vpop.f32.mrb[29].mxu1  ;;  %4575 = vmatprep.subr.mxu0 %v4808_v8 }
 0x1f1   : > { %4580 = vmatprep.subr.mxu1 %v4808_v8 }
 0x1f2   : > { %4568 = vmatmul.mubr.msk.f32.vlgmr.msra.gmra.mrb[44].mxu0 %vm1476_vm3, %v2702_v27 }
 0x1f3   : > { %4573 = vmatmul.mubr.msk.f32.vlgmr.msra.gmra.mrb[44].mxu1 %vm1476_vm3, %v2703_v3  ;;  %4577 = vmatprep.mubr.msk.f32.mxu0 %vm4807_vm2, %v4808_v8 }
 0x1f4   : > { %4582 = vmatprep.mubr.msk.f32.mxu1 %vm4807_vm2, %v4808_v8 }
 0x1f6   : > { %v2568_v31 = vpop.f32.mrb[30].mxu0 }
 0x1f7   : > { %v2704_v32 = vmul.f32 %v5223_v56, %v2568_v31  ;;  %v2641_v33 = vpop.f32.mrb[30].mxu1  ;;  %v4497_v34 = vpop.f32.mrb[31].mxu0  ;;  %4576 = vmatpush3.xpose.msk.msra.mxu0 %vm1476_vm3, %v2568_v31 }
 0x1f8   : > { %v2705_v35 = vmul.f32 %v5227_v57, %v2641_v33  ;;  %4581 = vmatpush3.xpose.msk.msra.mxu1 %vm1476_vm3, %v2641_v33  ;;  %v4504_v36 = vpop.f32.mrb[31].mxu1 }
 0x1fa   : > { %4578 = vmatmul.mubr.msk.f32.vlgmr.msra.gmra.mrb[46].mxu0 %vm1476_vm3, %v2704_v32 }
 0x1fb   : > { %4583 = vmatmul.mubr.msk.f32.vlgmr.msra.gmra.mrb[46].mxu1 %vm1476_vm3, %v2705_v35 }
 0x295   : > { %v2778_v37 = vpop.f32.mrb[32].mxu0 }
 0x296   : > { %v3922_v8 = vsel %vm256_vm0, %v2778_v37, 0.0  ;;  %v2854_v38 = vpop.f32.mrb[32].mxu1  ;;  %v4509_v39 = vpop.f32.mrb[33].mxu0 }
 0x297   : > { %v3923_v40 = vsel %vm256_vm0, %v2854_v38, 0.0  ;;  %v4514_v41 = vpop.f32.mrb[33].mxu1 }
 0x298   : > { %v3924_v42 = vadd.f32 %v3923_v40, %v3922_v8 }
 0x29d   : > { %v2930_v43 = vpop.f32.mrb[34].mxu0 }
 0x29e   : > { %v3925_v44 = vsel %vm256_vm0, %v2930_v43, 0.0  ;;  %v4519_v45 = vpop.f32.mrb[35].mxu0  ;;  %v3006_v46 = vpop.f32.mrb[34].mxu1 }
 0x29f   : > { %v3926_v47 = vadd.f32 %v3925_v44, %v3924_v42  ;;  %v3927_v48 = vsel %vm256_vm0, %v3006_v46, 0.0  ;;  %v4524_v49 = vpop.f32.mrb[35].mxu1 }
 0x2a1   : > { %v3928_v50 = vadd.f32 %v3927_v48, %v3926_v47 }
 0x2a3   : > { %3950 = vst.msk [vmem:[%s5316_s10] sm:$0xff] %vm256_vm0, %v3928_v50 }
 0x2a5   : > { %v3082_v51 = vpop.f32.mrb[36].mxu0 }
 0x2a6   : > { %v3929_v52 = vsel %vm256_vm0, %v3082_v51, 0.0  ;;  %v3158_v53 = vpop.f32.mrb[36].mxu1  ;;  %v4529_v54 = vpop.f32.mrb[37].mxu0 }
 0x2a7   : > { %v3930_v55 = vsel %vm256_vm0, %v3158_v53, 0.0  ;;  %v4534_v56 = vpop.f32.mrb[37].mxu1 }
 0x2a8   : > { %v3931_v57 = vadd.f32 %v3930_v55, %v3929_v52 }
 0x2ad   : > { %v3234_v58 = vpop.f32.mrb[38].mxu0 }
 0x2ae   : > { %v3932_v59 = vsel %vm256_vm0, %v3234_v58, 0.0  ;;  %v4539_v60 = vpop.f32.mrb[39].mxu0  ;;  %v3310_v61 = vpop.f32.mrb[38].mxu1 }
 0x2af   : > { %v3933_v62 = vadd.f32 %v3932_v59, %v3931_v57  ;;  %v3934_v63 = vsel %vm256_vm0, %v3310_v61, 0.0  ;;  %v4544_v0 = vpop.f32.mrb[39].mxu1 }
 0x2b1   : > { %v3935_v1 = vadd.f32 %v3934_v63, %v3933_v62 }
 0x2b3   : > { %3951 = vst.msk [vmem:[%s5316_s10 + $0x8] sm:$0xff] %vm256_vm0, %v3935_v1 }
 0x2b5   : > { %v3386_v2 = vpop.f32.mrb[40].mxu0 }
 0x2b6   : > { %v3936_v4 = vsel %vm256_vm0, %v3386_v2, 0.0  ;;  %v3462_v5 = vpop.f32.mrb[40].mxu1  ;;  %v4549_v6 = vpop.f32.mrb[41].mxu0 }
 0x2b7   : > { %v3937_v7 = vsel %vm256_vm0, %v3462_v5, 0.0  ;;  %v4554_v9 = vpop.f32.mrb[41].mxu1 }
 0x2b8   : > { %v3938_v10 = vadd.f32 %v3937_v7, %v3936_v4 }
 0x2bd   : > { %v3538_v11 = vpop.f32.mrb[42].mxu0 }
 0x2be   : > { %v3939_v12 = vsel %vm256_vm0, %v3538_v11, 0.0  ;;  %v4559_v13 = vpop.f32.mrb[43].mxu0  ;;  %v3614_v14 = vpop.f32.mrb[42].mxu1 }
 0x2bf   : > { %v3940_v15 = vadd.f32 %v3939_v12, %v3938_v10  ;;  %v3941_v16 = vsel %vm256_vm0, %v3614_v14, 0.0  ;;  %v4564_v17 = vpop.f32.mrb[43].mxu1 }
 0x2c1   : > { %v3942_v18 = vadd.f32 %v3941_v16, %v3940_v15 }
 0x2c3   : > { %3952 = vst.msk [vmem:[%s5316_s10 + $0x10] sm:$0xff] %vm256_vm0, %v3942_v18 }
 0x2c5   : > { %v3690_v19 = vpop.f32.mrb[44].mxu0 }
 0x2c6   : > { %v3943_v20 = vsel %vm256_vm0, %v3690_v19, 0.0  ;;  %v3766_v21 = vpop.f32.mrb[44].mxu1  ;;  %v4569_v22 = vpop.f32.mrb[45].mxu0 }
 0x2c7   : > { %v3944_v23 = vsel %vm256_vm0, %v3766_v21, 0.0  ;;  %v4574_v24 = vpop.f32.mrb[45].mxu1 }
 0x2c8   : > { %v3945_v25 = vadd.f32 %v3944_v23, %v3943_v20 }
 0x2cd   : > { %v3842_v26 = vpop.f32.mrb[46].mxu0 }
 0x2ce   : > { %v3946_v27 = vsel %vm256_vm0, %v3842_v26, 0.0  ;;  %v3918_v28 = vpop.f32.mrb[46].mxu1  ;;  %v4579_v29 = vpop.f32.mrb[47].mxu0 }
 0x2cf   : > { %v3947_v3 = vadd.f32 %v3946_v27, %v3945_v25  ;;  %v3948_v30 = vsel %vm256_vm0, %v3918_v28, 0.0  ;;  %v4584_v31 = vpop.f32.mrb[47].mxu1 }
 0x2d1   : > { %v3949_v32 = vadd.f32 %v3948_v30, %v3947_v3 }
 0x2d3   : > { %3953 = vst.msk [vmem:[%s5316_s10 + $0x18] sm:$0xff] %vm256_vm0, %v3949_v32 }
 0x2d4   : > { %4755 = shalt.err (!%p4752_p3)
}
 0x2d5   : > { %s4756_s29 = scalar_lea.hbm %s5343_s20, 512  ;;  %s4760_s6 = scalar_lea.hbm %s5394_s4, 1024 }
 0x2d6   : > { %p4757_p4 = scmp.ne.s32.totalorder %s5343_s20, %s4756_s29  ;;  %p4761_p9 = scmp.lt.u32.totalorder %s5343_s20, %s5394_s4 }
 0x2d7   : > { %p4762_p10 = scmp.lt.u32.totalorder %s4760_s6, %s4756_s29  ;;  %p4764_p12 = scmp.lt.u32.totalorder %s4756_s29, %s5343_s20 }
 0x2d8   : > { %p4758_p7 = pnand %p4757_p4, %p4876_p5 }
 0x2d9   : > { %p4763_p11 = por %p4762_p10, %p4761_p9 }
 0x2da   : > { %p4759_p8 = pneg %p4758_p7 }
 0x2db   : > { %p4765_p13 = por %p4764_p12, %p4763_p11 }
 0x2dd   : > { %p4766_p0 = pnand %p4765_p13, %p4759_p8 }
 0x2df   : > { %4769 = shalt.err (!%p4766_p0)
}
 0x2e0   : > { %s4811_s9 = smov 128   ;;  %s4812_s10 = smov 8  }
 0x2e1   : > { %4697 = dma.vmem_to_hbm [thread:$0]  (%p4876_p5), %s5338_s11, 512, %s5343_s20, %s5349_s22, %s4811_s9, %s4811_s9, %s4812_s10  }
 0x2e2 PF: > { %p4703_p1 = scmp.ge.s32.totalorder %s4804_s18, 2  ;;  %s3983_s12 = sand.u32 1, %s4792_s15  }
 0x2e3   : > { %s3984_s13 = scalar_lea.sflag [#allocation3], %s3983_s12 }
 0x2e4   : > { %p4700_p2 = pnand %p4703_p1, %p4880_p6 }
 0x2e6   : > { %4787 = dma.done.wait (!%p4700_p2), %s3984_s13, 512  }
 0x2e7   : > { %4789 = vsyncadd (!%p4700_p2), %s3984_s13, 4294966784  ;;  %p14_p3 = scmp.ge.s32.totalorder %s4863_s21, 4   ;;  %s5399_s15 = smov %s4796_s16 }
 0x2e8   : > { %s5400_s16 = smov %s4800_s17  ;;  %s5401_s17 = smov %s4874_s24 }
 0x2e9   : > { %s5402_s18 = smov %s4863_s21  ;;  %16 = sbr.rel (!%p14_p3) target bundleno = 3 (0x3), region = 74 }
 0x2f0   :  { %3989 = vsyncpa [#allocation3], 1 }
 0x2f1   :  { %3991 = vsyncpa [#allocation3 + $0x1], 1 }

</bundles_post_ra>
